<compile_context>
chip_gen: v6e
topology: v6e:2x2x1
jax: 0.10.0
libtpu: 0.0.40
codegen_flags: <defaults>
</compile_context>

<pallas_src>
import functools

import jax
import jax.numpy as jnp
from jax.experimental import pallas as pl
from jax.experimental.pallas import tpu as pltpu

_NEG_LOG_EPS = 18.420680743952367  # -log(1e-8): reproduces the "+1e-8" clamp
_PAD_LOGIT = 1e4  # pad head0=+P / head1=-P  =>  softplus contribution is exactly 0


# ---------------------------------------------------------------------------
# Tiled kernel: grid = (B-tiles, C-tiles), reduction (C) axis last.
# x0_ref / x1_ref are the head-0 / head-1 column windows of the same HBM
# array.  acc_ref is an (8, TC) f32 VMEM scratch of vreg-aligned partial
# sums; the scalar collapse runs only at the last C-tile of each B-tile.
# ---------------------------------------------------------------------------
def _ova_all_tiled_kernel(x0_ref, x1_ref, tgt_ref, out_ref, acc_ref, *, c_tile):
    j = pl.program_id(1)

    @pl.when(j == 0)
    def _():
        acc_ref[...] = jnp.zeros_like(acc_ref)

    # One cast per element: subtract in the input dtype (bf16 VALU exists on
    # v6e/v7x), promote the difference once.
    d = (x1_ref[...] - x0_ref[...]).astype(jnp.float32)        # (TB, TC)

    # Shift the (TB, 1) target column into tile-local coordinates instead of
    # adding j*TC to the big (TB, TC) iota.
    tgt_local = tgt_ref[...] - j * c_tile                       # (TB, 1) int32
    is_target = jax.lax.broadcasted_iota(jnp.int32, d.shape, 1) == tgt_local

    # -log(softmax over the 2 heads) collapses to a softplus of the difference:
    #   non-target: -log(p0) = softplus(d)
    #   target:     -log(p1) = softplus(-d) = softplus(d) - d
    sp = jnp.maximum(d, 0.0) + jnp.log(1.0 + jnp.exp(-jnp.abs(d)))
    val = jnp.minimum(sp - jnp.where(is_target, d, 0.0), _NEG_LOG_EPS)

    # Fold TB rows into an (8, TC) partial with plain VPU adds (static whole
    # sublane-group slices -> no relayout, no per-step XLU reduce).
    part = val[0:8, :]
    for g in range(1, val.shape[0] // 8):
        part = part + val[g * 8:(g + 1) * 8, :]
    acc_ref[...] += part

    # Collapse to a scalar only once per B-tile.
    @pl.when(j == pl.num_programs(1) - 1)
    def _():
        out_ref[...] = jnp.reshape(jnp.sum(acc_ref[...]), (1, 1, 1))


def _round_up(n, m):
    return ((n + m - 1) // m) * m


def _pick_tile(n, align, max_tile):
    """Largest t <= max_tile with t % align == 0 and n % t == 0 (n % align == 0)."""
    best = align
    t = align
    while t <= min(n, max_tile):
        if n % t == 0:
            best = t
        t += align
    return best


def _vmem_capacity_bytes():
    try:
        return int(pltpu.get_tpu_info().vmem_capacity_bytes)
    except Exception:
        return 64 * 1024 * 1024  # conservative (v7x-sized) fallback


def ova_all_loss(logits_open, targets, *, max_b_tile=None, max_c_tile=None):
    """logits_open: (B, 2*C) float, targets: (B,) int -> scalar float32 loss."""
    b, two_c = logits_open.shape
    c = two_c // 2
    tgt = targets.astype(jnp.int32).reshape(b, 1)

    # Tile caps / VMEM budget by generation: 128 MiB parts (v5e/v6e) take
    # bigger blocks (fewer grid steps on the HBM-bound path); 64 MiB parts
    # (v7x) keep the smaller footprint (compute-bound there anyway).
    big_vmem = _vmem_capacity_bytes() >= 100 * 1024 * 1024
    if max_b_tile is None:
        max_b_tile = 1024 if big_vmem else 512
    if max_c_tile is None:
        max_c_tile = 4096 if big_vmem else 2048
    vmem_limit = (96 if big_vmem else 32) * 1024 * 1024

    # bf16 inputs stay bf16 in HBM (halves traffic); pack sublanes by 16.
    b_align = 16 if logits_open.dtype.itemsize == 2 else 8
    max_b_tile = max(max_b_tile, b_align)
    max_c_tile = max(max_c_tile, 128)

    # Pad-and-tile: pad the class axis to a lane multiple and the batch axis
    # to a sublane multiple.  Padding uses head0=+P / head1=-P (and target=-1
    # for padded rows) so every padded element contributes exactly 0 to the
    # sum -- one kernel, no in-kernel masks, no single-block VMEM cliff.
    b_pad = _round_up(b, b_align)
    c_pad = _round_up(c, 128)
    if b_pad != b or c_pad != c:
        # TODO(synk): this materializes one extra HBM pass for irregular
        # shapes only; the aligned (common) case pays nothing.
        x3 = logits_open.reshape(b, 2, c)
        pad_cfg = ((0, b_pad - b), (0, c_pad - c))
        h0 = jnp.pad(x3[:, 0, :], pad_cfg, constant_values=_PAD_LOGIT)
        h1 = jnp.pad(x3[:, 1, :], pad_cfg, constant_values=-_PAD_LOGIT)
        logits_p = jnp.concatenate([h0, h1], axis=1)
        tgt_p = jnp.pad(tgt, ((0, b_pad - b), (0, 0)), constant_values=-1)
    else:
        logits_p, tgt_p = logits_open, tgt

    # v7x megacore: guarantee >= 2 B-tiles whenever alignment permits so the
    # "parallel" B axis keeps both TensorCores busy.
    tb_cap = max_b_tile
    if b_pad >= 2 * b_align:
        tb_cap = min(tb_cap, b_pad // 2)
    tb = _pick_tile(b_pad, b_align, tb_cap)
    tc = _pick_tile(c_pad, 128, max_c_tile)

    num_bt = b_pad // tb
    num_ct = c_pad // tc
    head_off = c_pad // tc  # head-1 columns start at block index c_pad // tc

    partials = pl.pallas_call(
        functools.partial(_ova_all_tiled_kernel, c_tile=tc),
        out_shape=jax.ShapeDtypeStruct((num_bt, 1, 1), jnp.float32),
        grid=(num_bt, num_ct),
        in_specs=[
            # Same HBM array passed twice; index_maps select the two heads.
            pl.BlockSpec((tb, tc), lambda i, j: (i, j)),
            pl.BlockSpec((tb, tc), lambda i, j: (i, j + head_off)),
            # targets column, replicated across C-tiles (tiny block).
            pl.BlockSpec((tb, 1), lambda i, j: (i, 0)),
        ],
        out_specs=pl.BlockSpec((1, 1, 1), lambda i, j: (i, 0, 0)),
        scratch_shapes=[pltpu.VMEM((8, tc), jnp.float32)],
        compiler_params=pltpu.CompilerParams(
            dimension_semantics=("parallel", "arbitrary"),
            vmem_limit_bytes=vmem_limit,
        ),
    )(logits_p, logits_p, tgt_p)

    return jnp.sum(partials) / jnp.float32(b)   # mean over the true batch size


def ova_all_loss_ref(logits_open, targets):
    """Pure-JAX reference mirroring the PyTorch forward exactly."""
    b = logits_open.shape[0]
    c = logits_open.shape[1] // 2
    lo = jax.nn.softmax(logits_open.reshape(b, 2, c).astype(jnp.float32), axis=1)
    onehot = jax.nn.one_hot(targets, c, dtype=jnp.float32)
    open_loss = jnp.mean(jnp.sum(-jnp.log(lo[:, 1, :] + 1e-8) * onehot, axis=1))
    open_loss_neg = jnp.mean(jnp.sum(-jnp.log(lo[:, 0, :] + 1e-8) * (1.0 - onehot), axis=1))
    return open_loss_neg + open_loss


if __name__ == "__main__":
    key = jax.random.PRNGKey(0)
    ks = jax.random.split(key, 8)

    # Case 1: tiny C (C = 16 < 128) -> lane-pad path, 1x1 grid.
    B1, C1 = 8, 16
    logits1 = jax.random.normal(ks[0], (B1, 2 * C1), dtype=jnp.float32)
    tgt1 = jax.random.randint(ks[1], (B1,), 0, C1, dtype=jnp.int32)
    out1 = jax.block_until_ready(ova_all_loss(logits1, tgt1))
    ref1 = jax.block_until_ready(ova_all_loss_ref(logits1, tgt1))
    assert jnp.allclose(out1, ref1, rtol=1e-5, atol=1e-5), (out1, ref1)

    # Case 2: aligned shapes, forced 2x2 grid (B-tiling, C-axis accumulation,
    # head offset, tile-local target offset, deferred reduce).
    B2, C2 = 64, 256
    logits2 = jax.random.normal(ks[2], (B2, 2 * C2), dtype=jnp.float32)
    tgt2 = jax.random.randint(ks[3], (B2,), 0, C2, dtype=jnp.int32)
    out2 = jax.block_until_ready(
        ova_all_loss(logits2, tgt2, max_b_tile=32, max_c_tile=128))
    ref2 = jax.block_until_ready(ova_all_loss_ref(logits2, tgt2))
    assert jnp.allclose(out2, ref2, rtol=1e-4, atol=1e-4), (out2, ref2)

    # Case 3: irregular B and C (10, 100) -> row + column pad-and-tile path.
    B3, C3 = 10, 100
    logits3 = jax.random.normal(ks[4], (B3, 2 * C3), dtype=jnp.float32)
    tgt3 = jax.random.randint(ks[5], (B3,), 0, C3, dtype=jnp.int32)
    out3 = jax.block_until_ready(ova_all_loss(logits3, tgt3))
    ref3 = jax.block_until_ready(ova_all_loss_ref(logits3, tgt3))
    assert jnp.allclose(out3, ref3, rtol=1e-4, atol=1e-4), (out3, ref3)

    # Case 4: bf16 inputs (16-row sublane packing, in-kernel bf16 subtract).
    B4, C4 = 32, 256
    logits4 = jax.random.normal(ks[6], (B4, 2 * C4), dtype=jnp.bfloat16)
    tgt4 = jax.random.randint(ks[7], (B4,), 0, C4, dtype=jnp.int32)
    out4 = jax.block_until_ready(ova_all_loss(logits4, tgt4))
    ref4 = jax.block_until_ready(ova_all_loss_ref(logits4, tgt4))
    assert jnp.allclose(out4, ref4, rtol=1e-2, atol=1e-2), (out4, ref4)

    print("KERNEL_OK")
</pallas_src>

<mosaic_0001>
module attributes {stable_mosaic.version = 11 : i64} {
  func.func @_ova_all_tiled_kernel(%arg0: i32, %arg1: i32, %arg2: memref<8x128xf32, #tpu.memory_space<vmem>>, %arg3: memref<8x128xf32, #tpu.memory_space<vmem>>, %arg4: memref<8x1xi32, #tpu.memory_space<vmem>>, %arg5: memref<1x1x1xf32, #tpu.memory_space<vmem>>, %arg6: memref<8x128xf32, #tpu.memory_space<vmem>>) attributes {dimension_semantics = [#tpu.dimension_semantics<parallel>, #tpu.dimension_semantics<arbitrary>], iteration_bounds = array<i64: 1, 1>, scalar_prefetch = 0 : i64, scratch_operands = 1 : i64, tpu.core_type = #tpu.core_type<tc>, window_params = [{transform_indices = @transform_0, window_bounds = array<i64: 8, 128>}, {transform_indices = @transform_1, window_bounds = array<i64: 8, 128>}, {transform_indices = @transform_2, window_bounds = array<i64: 8, 1>}, {transform_indices = @transform_3, window_bounds = array<i64: 1, 1, 1>}]} {
    %c0_i32 = arith.constant 0 : i32
    %0 = arith.cmpi eq, %arg1, %c0_i32 : i32
    %1 = arith.extui %0 : i1 to i32
    %c0_i32_0 = arith.constant 0 : i32
    %2 = arith.cmpi ne, %1, %c0_i32_0 : i32
    scf.if %2 {
      %cst_16 = arith.constant 0.000000e+00 : f32
      %34 = vector.broadcast %cst_16 : f32 to vector<8x128xf32>
      %c0_17 = arith.constant 0 : index
      %c0_18 = arith.constant 0 : index
      %35 = vector.load %arg6[%c0_17, %c0_18] : memref<8x128xf32, #tpu.memory_space<vmem>>, vector<8x128xf32>
      tpu.vector_store %arg6[%c0_17, %c0_18], %34 {strides = array<i32>} : memref<8x128xf32, #tpu.memory_space<vmem>>, vector<8x128xf32>,
    } else {
    }
    %c0 = arith.constant 0 : index
    %c0_1 = arith.constant 0 : index
    %3 = vector.load %arg3[%c0, %c0_1] : memref<8x128xf32, #tpu.memory_space<vmem>>, vector<8x128xf32>
    %c0_2 = arith.constant 0 : index
    %c0_3 = arith.constant 0 : index
    %4 = vector.load %arg2[%c0_2, %c0_3] : memref<8x128xf32, #tpu.memory_space<vmem>>, vector<8x128xf32>
    %5 = arith.subf %3, %4 : vector<8x128xf32>
    %c0_4 = arith.constant 0 : index
    %c0_5 = arith.constant 0 : index
    %6 = vector.load %arg4[%c0_4, %c0_5] : memref<8x1xi32, #tpu.memory_space<vmem>>, vector<8x1xi32>
    %c128_i32 = arith.constant 128 : i32
    %7 = arith.muli %arg1, %c128_i32 : i32
    %8 = vector.broadcast %7 : i32 to vector<8x1xi32>
    %9 = arith.subi %6, %8 : vector<8x1xi32>
    %10 = tpu.iota {dimensions = array<i32: 1>} : vector<8x128xi32>
    %11 = vector.broadcast %9 : vector<8x1xi32> to vector<8x128xi32>
    %12 = arith.cmpi eq, %10, %11 : vector<8x128xi32>
    %cst = arith.constant 0.000000e+00 : f32
    %13 = vector.broadcast %cst : f32 to vector<8x128xf32>
    %14 = arith.maximumf %5, %13 : vector<8x128xf32>
    %15 = math.absf %5 : vector<8x128xf32>
    %cst_6 = arith.constant 0.000000e+00 : f32
    %16 = vector.broadcast %cst_6 : f32 to vector<8x128xf32>
    %17 = arith.subf %16, %15 : vector<8x128xf32>
    %18 = math.exp %17 : vector<8x128xf32>
    %cst_7 = arith.constant 1.000000e+00 : f32
    %19 = vector.broadcast %cst_7 : f32 to vector<8x128xf32>
    %20 = arith.addf %19, %18 : vector<8x128xf32>
    %21 = math.log %20 : vector<8x128xf32>
    %22 = arith.addf %14, %21 : vector<8x128xf32>
    %cst_8 = arith.constant 0.000000e+00 : f32
    %23 = vector.broadcast %cst_8 : f32 to vector<8x128xf32>
    %24 = arith.select %12, %5, %23 : vector<8x128xi1>, vector<8x128xf32>
    %25 = arith.subf %22, %24 : vector<8x128xf32>
    %cst_9 = arith.constant 18.420681 : f32
    %26 = vector.broadcast %cst_9 : f32 to vector<8x128xf32>
    %27 = arith.minimumf %25, %26 : vector<8x128xf32>
    %c0_10 = arith.constant 0 : index
    %c0_11 = arith.constant 0 : index
    %28 = vector.load %arg6[%c0_10, %c0_11] : memref<8x128xf32, #tpu.memory_space<vmem>>, vector<8x128xf32>
    %29 = arith.addf %28, %27 : vector<8x128xf32>
    %c0_12 = arith.constant 0 : index
    %c0_13 = arith.constant 0 : index
    %30 = vector.load %arg6[%c0_12, %c0_13] : memref<8x128xf32, #tpu.memory_space<vmem>>, vector<8x128xf32>
    tpu.vector_store %arg6[%c0_12, %c0_13], %29 {strides = array<i32>} : memref<8x128xf32, #tpu.memory_space<vmem>>, vector<8x128xf32>,
    %c0_i32_14 = arith.constant 0 : i32
    %31 = arith.cmpi eq, %arg1, %c0_i32_14 : i32
    %32 = arith.extui %31 : i1 to i32
    %c0_i32_15 = arith.constant 0 : i32
    %33 = arith.cmpi ne, %32, %c0_i32_15 : i32
    scf.if %33 {
      %c0_16 = arith.constant 0 : index
      %c0_17 = arith.constant 0 : index
      %34 = vector.load %arg6[%c0_16, %c0_17] : memref<8x128xf32, #tpu.memory_space<vmem>>, vector<8x128xf32>
      %35 = vector.shape_cast %34 : vector<8x128xf32> to vector<1x8x128xf32>
      %cst_18 = arith.constant dense<0.000000e+00> : vector<1xf32>
      %36 = vector.multi_reduction <add>, %35, %cst_18 [1, 2] : vector<1x8x128xf32> to vector<1xf32>
      %37 = vector.shape_cast %36 : vector<1xf32> to vector<1x1x1xf32>
      %38 = vector.extract %37[0, 0, 0] : f32 from vector<1x1x1xf32>
      %39 = vector.broadcast %38 : f32 to vector<1x1x1xf32>
      %c0_19 = arith.constant 0 : index
      %c0_20 = arith.constant 0 : index
      %c0_21 = arith.constant 0 : index
      %40 = vector.load %arg5[%c0_19, %c0_20, %c0_21] : memref<1x1x1xf32, #tpu.memory_space<vmem>>, vector<1x1x1xf32>
      tpu.vector_store %arg5[%c0_19, %c0_20, %c0_21], %39 {strides = array<i32>} : memref<1x1x1xf32, #tpu.memory_space<vmem>>, vector<1x1x1xf32>,
    } else {
    }
    return
  }
  func.func @transform_0(%arg0: i32, %arg1: i32) -> (i32, i32) {
    %c0_i32 = arith.constant 0 : i32
    return %arg0, %arg1 : i32, i32
  }
  func.func @transform_1(%arg0: i32, %arg1: i32) -> (i32, i32) {
    %c1_i32 = arith.constant 1 : i32
    %0 = arith.addi %arg1, %c1_i32 : i32
    %c0_i32 = arith.constant 0 : i32
    return %arg0, %0 : i32, i32
  }
  func.func @transform_2(%arg0: i32, %arg1: i32) -> (i32, i32) {
    %c0_i32 = arith.constant 0 : i32
    %c0_i32_0 = arith.constant 0 : i32
    return %arg0, %c0_i32 : i32, i32
  }
  func.func @transform_3(%arg0: i32, %arg1: i32) -> (i32, i32, i32) {
    %c0_i32 = arith.constant 0 : i32
    %c0_i32_0 = arith.constant 0 : i32
    %c0_i32_1 = arith.constant 0 : i32
    return %arg0, %c0_i32, %c0_i32_0 : i32, i32, i32
  }
}

</mosaic_0001>

<bundles_post_ra>
// kernel: tpu_custom_call.1
= control target key start
LH: loop header
LB: loop body
LE: loop exit
PB: predicated region body
PF: predicated region fallthrough
CT: control target
= control target key end

     0   :  { %8 = vsyncpa [#allocation4], 0  ;;  %s225_s0 = inlined_call_operand.hbm [shape: f32[8,256], index: 0, kind: input, shape index: {}]   ;;  %s226_s1 = inlined_call_operand.hbm [shape: f32[8,256], index: 1, kind: input, shape index: {}]   ;;  %s227_s2 = inlined_call_operand.vmem [shape: s32[8,1], index: 2, kind: input, shape index: {}]   ;;  %s228_s3 = inlined_call_operand.hbm [shape: f32[1,1,1], index: 3, kind: output, shape index: {}]  }
   0x1   :  { %9 = vsyncpa [#allocation7], 0 }
   0x2   :  { %10 = vsyncpa [#allocation5], 0  ;;  %s108_s14 = scalar_lea.hbm %s226_s1, 128  ;;  %s189_s15 = smov [#allocation3]  }
   0x3   :  { %s17_s16 = sshll.u32 %s189_s15, 4  ;;  %s190_s17 = smov [#allocation6]   ;;  %s18_s16 = int_to_ptr.vmem [resolvable:$true] %s17_s16 }
   0x4   :  { %s30_s18 = sshll.u32 %s190_s17, 4  ;;  %s128_s19 = scalar_lea.vmem %s18_s16, 128  ;;  %s31_s18 = int_to_ptr.vmem [resolvable:$true] %s30_s18 }
   0x5   :  { %p129_p0 = scmp.ne.s32.totalorder %s18_s16, %s128_s19  ;;  %p133_p1 = scmp.lt.s32.totalorder %s18_s16, %s18_s16 }
   0x6   :  { %p134_p2 = scmp.lt.s32.totalorder %s128_s19, %s128_s19 }
   0x8   :  { %p135_p3 = por %p134_p2, %p133_p1 }
   0xa   :  { %p136_p4 = pnand %p135_p3, %p129_p0 }
   0xc   :  { %139 = shalt.err (!%p136_p4)
}
   0xd   :  { %20 = dma.hbm_to_vmem [thread:$0]  %s225_s0, 128, %s18_s16, [#allocation4]  }
   0xe   :  { %s150_s22 = scalar_lea.vmem %s31_s18, 128  ;;  %p155_p6 = scmp.lt.s32.totalorder %s31_s18, %s31_s18 }
   0xf   :  { %p151_p5 = scmp.ne.s32.totalorder %s31_s18, %s150_s22  ;;  %p156_p7 = scmp.lt.s32.totalorder %s150_s22, %s150_s22 }
  0x11   :  { %p157_p8 = por %p156_p7, %p155_p6 }
  0x13   :  { %p158_p9 = pnand %p157_p8, %p151_p5 }
  0x15   :  { %161 = shalt.err (!%p158_p9)
}
  0x16   :  { %33 = dma.hbm_to_vmem [thread:$0]  %s108_s14, 128, %s31_s18, [#allocation7]  }
  0x17   :  { %183 = dma.done.wait [#allocation4], 128  }
  0x18   :  { %184 = vsyncadd [#allocation4], 4294967168 }
  0x19   :  { %185 = dma.done.wait [#allocation7], 128  }
  0x1a   :  { %186 = vsyncadd [#allocation7], 4294967168  ;;  %v191_v0 = vmov 0   ;;  %v51_v1 = vld [vmem:[%s227_s2] sm:$0xff]  ;;  %v48_v2 = vld [vmem:[#allocation6] sm:$0xff]  ;;  %v55_v11 = vlaneseq  ;;  %s192_s0 = smov [#allocation8]  }
  0x1b   :  { %115 = vset.pattern.permute.xlu0 %v191_v0  ;;  %v49_v3 = vld [vmem:[#allocation3] sm:$0xff]  ;;  %s98_s2 = sshll.u32 %s192_s0, 4  ;;  %vm90_vm1 = vcmask 0   ;;  %s99_s2 = int_to_ptr.vmem [resolvable:$true] %s98_s2 }
  0x1c   :  { %58 = vperm.xlu0 %115, %v51_v1   ;;  %v50_v4 = vsub.f32 %v48_v2, %v49_v3  ;;  %v56_v14 = vand.u32 127, %v55_v11  ;;  %s163_s25 = scalar_lea.vmem %s99_s2, 16  ;;  %s167_s26 = scalar_lea.vmem %s99_s2, 32 }
  0x1d   :  { %p164_p10 = scmp.ne.s32.totalorder %s99_s2, %s163_s25  ;;  %p168_p11 = scmp.lt.s32.totalorder %s99_s2, %s99_s2 }
  0x1e   :  { %v62_v5 = vand.u32 2147483647, %v50_v4  ;;  %v61_v12 = vmax.f32 %v50_v4, 0.0  ;;  %p169_p12 = scmp.lt.s32.totalorder %s167_s26, %s163_s25 }
  0x20   :  { %v63_v6 = vsub.f32 0.0, %v62_v5  ;;  %p170_p13 = por %p169_p12, %p168_p11 }
  0x22   :  { %v64_v7 = vmul.f32 1.442695, %v63_v6  ;;  %p171_p0 = pnand %p170_p13, %p164_p10 }
  0x24   :  { %116 = vpow2.f32 %v64_v7 }
  0x31   :  { %v117_v8 = vpop.eup %116 }
  0x32   :  { %v66_v9 = vadd.f32 1.0, %v117_v8 }
  0x34   :  { %118 = vlog2.f32 %v66_v9 }
  0x41   :  { %v119_v10 = vpop.eup %118 }
  0x42   :  { %v68_v13 = vmul.f32 0.6931472, %v119_v10 }
  0x44   :  { %v69_v15 = vadd.f32 %v68_v13, %v61_v12 }
  0x97   :  { %v59_v16 = vpop.permute.xlu0 %58 }
  0x98   :  { %vm60_vm0 = vcmp.eq.s32.totalorder %v56_v14, %v59_v16 }
  0x99   :  { %v70_v17 = vsel %vm60_vm0, %v50_v4, 0.0 }
  0x9a   :  { %v71_v18 = vsub.f32 %v69_v15, %v70_v17 }
  0x9c   :  { %v72_v19 = vmin.f32 %v71_v18, 18.420681 }
  0x9e   :  { %80 = vadd.xlane.f32.xlu0 %v72_v19 }
 0x127   :  { %v81_v20 = vpop.xlane.xlu0 %80 }
 0x128   :  { %v82_v21 = vrot.slane %v81_v20, 4 }
 0x12a   :  { %v83_v22 = vadd.f32 %v82_v21, %v81_v20 }
 0x12c   :  { %v84_v23 = vrot.slane %v83_v22, 2 }
 0x12e   :  { %v85_v24 = vadd.f32 %v84_v23, %v83_v22 }
 0x130   :  { %v86_v25 = vrot.slane %v85_v24, 1 }
 0x132   :  { %v87_v26 = vadd.f32 %v86_v25, %v85_v24 }
 0x134   :  { %109 = vpush %v87_v26 }
 0x165   :  { %s110_s24 = spop %109 }
 0x166   :  { %v89_v27 = vstv %s110_s24 }
 0x167   :  { %91 = vst.msk [vmem:[#allocation8] sm:$0x1] %vm90_vm1, %v89_v27 }
 0x168   :  { %174 = shalt.err (!%p171_p0)
}
 0x169   :  { %101 = dma.vmem_to_hbm [thread:$0]  %s99_s2, 16, %s228_s3, [#allocation5]  }
 0x16a   :  { %187 = dma.done.wait [#allocation5], 16  }
 0x16b   :  { %188 = vsyncadd [#allocation5], 4294967280 }
 0x16c   :  { %105 = vsyncpa [#allocation4], 1 }
 0x16d   :  { %106 = vsyncpa [#allocation7], 1 }
 0x16e   :  { %107 = vsyncpa [#allocation5], 1 }

</bundles_post_ra>
